<compile_context>
chip_gen: v6e
topology: v6e:2x2x1
jax: 0.10.0
libtpu: 0.0.40
codegen_flags: <defaults>
</compile_context>

<pallas_src>
import jax
import jax.numpy as jnp
from jax import lax
from jax.experimental import pallas as pl
from jax.experimental.pallas import tpu as pltpu


def _relu(t):
    return jnp.maximum(t, 0.0)


# ----------------------------- Pallas kernel ------------------------------ #
def _dnn_kernel(xT_ref,
                w0_ref, b0_ref,
                w1_ref, b1_ref,
                w2_ref, b2_ref,
                wo_ref, bo_ref,
                o_ref):
    """Transposed layout. xT: (D, TB); weights (out, in) [PyTorch layout];
    biases (out, 1); output (2, TB).  Batch lives on the lane axis."""
    x = xT_ref[...]

    # layers[0]: Linear(input_dim -> n0) + ReLU
    h = _relu(jnp.dot(w0_ref[...], x, preferred_element_type=jnp.float32)
              + b0_ref[...])
    # layers[1]: Linear(n0 -> n1) + ReLU ; layers[2]: Dropout(eval)=identity + ReLU
    # (the second ReLU is elided exactly -- ReLU is idempotent)
    h = _relu(jnp.dot(w1_ref[...], h.astype(w1_ref.dtype),
                      preferred_element_type=jnp.float32) + b1_ref[...])
    # layers[3]: Linear(n1 -> n2) + ReLU ; layers[4]: Dropout(eval)=identity + ReLU
    h = _relu(jnp.dot(w2_ref[...], h.astype(w2_ref.dtype),
                      preferred_element_type=jnp.float32) + b2_ref[...])

    # output_layer: Linear(n2 -> 2), then log_softmax over the 2 classes
    # (class axis = sublanes in this layout).
    logits = (jnp.dot(wo_ref[...], h.astype(wo_ref.dtype),
                      preferred_element_type=jnp.float32) + bo_ref[...])   # (2, TB)

    c0 = logits[0:1, :]
    c1 = logits[1:2, :]
    m = jnp.maximum(c0, c1)
    lse = m + jnp.log(jnp.exp(c0 - m) + jnp.exp(c1 - m))   # (1, TB), includes m
    o_ref[...] = logits - lse                                # single lane-dense store


# ------------------------------ host wrapper ------------------------------ #
def _round_up(v, m):
    return -(-v // m) * m


def dnn_forward(x, params, *, block_rows=8192, use_bf16=True,
                x_transposed=False, min_grid_steps=2):
    """Forward pass of DNNModel (eval mode).

    x: (B, D) f32, or (D, B) if x_transposed=True (preferred: avoids the one
       host-side transpose pass over the dominant HBM stream).
    params: (w0,b0,w1,b1,w2,b2,wo,bo) with PyTorch layouts: w (out,in), b (out,1).
    block_rows: max batch-tile size (lane axis); capped so the grid keeps at
       least `min_grid_steps` steps (keeps both v7x TensorCores busy).
    use_bf16: store x / weights as bf16 (MXU-native on v5e/v6e/v7x); all dots
       accumulate in f32, biases and post-dot math stay f32.
    Returns (B, 2) f32 log-probabilities.
    """
    w0, b0, w1, b1, w2, b2, wo, bo = params
    if x_transposed:
        D, B = x.shape
        xT = x
    else:
        B, D = x.shape
        xT = x.T     # one extra XLA pass over x; supply x^T to avoid it

    n0, n1, n2, nout = w0.shape[0], w1.shape[0], w2.shape[0], wo.shape[0]

    # Batch tile on the lane axis: multiple of 128 (or the full batch when
    # B < 128), at most block_rows, small enough for >= min_grid_steps steps.
    if B < 128:
        TB = B
    else:
        tb_cap = max(128, (block_rows // 128) * 128)
        tb_split = max(128, _round_up(pl.cdiv(B, min_grid_steps), 128))
        TB = min(tb_cap, tb_split)
    grid = (pl.cdiv(B, TB),)        # partial last block is masked by Pallas

    cdt = jnp.bfloat16 if use_bf16 else jnp.float32
    xT = xT.astype(cdt)
    w0c, w1c, w2c, woc = (w.astype(cdt) for w in (w0, w1, w2, wo))

    const = lambda i: (0, 0)        # weights / biases: VMEM-resident across grid
    in_specs = [
        pl.BlockSpec((D, TB), lambda i: (0, i)),              # x^T tile
        pl.BlockSpec((n0, D), const),   pl.BlockSpec((n0, 1), const),
        pl.BlockSpec((n1, n0), const),  pl.BlockSpec((n1, 1), const),
        pl.BlockSpec((n2, n1), const),  pl.BlockSpec((n2, 1), const),
        pl.BlockSpec((nout, n2), const), pl.BlockSpec((nout, 1), const),
    ]
    out_specs = pl.BlockSpec((nout, TB), lambda i: (0, i))    # lane-dense store
    out_shape = jax.ShapeDtypeStruct((nout, B), jnp.float32)

    outT = pl.pallas_call(
        _dnn_kernel,
        out_shape=out_shape,
        grid=grid,
        in_specs=in_specs,
        out_specs=out_specs,
        compiler_params=pltpu.CompilerParams(
            dimension_semantics=("parallel",)),   # batch shards across TCs (v7x)
    )(xT, w0c, b0, w1c, b1, w2c, b2, woc, bo)

    return outT.T      # (B, 2); tiny, negligible transpose


# -------------------------- deterministic params --------------------------- #
def make_params(key, input_dim, neurons):
    """PyTorch nn.Linear-style uniform(-1/sqrt(fan_in), 1/sqrt(fan_in)) init.
    Weights stored (out_features, in_features), biases (out_features, 1)."""
    dims = [input_dim] + list(neurons) + [2]
    params = []
    for i in range(len(dims) - 1):
        fan_in, fan_out = dims[i], dims[i + 1]
        key, kw, kb = jax.random.split(key, 3)
        bound = 1.0 / jnp.sqrt(jnp.float32(fan_in))
        w = jax.random.uniform(kw, (fan_out, fan_in), jnp.float32, -bound, bound)
        b = jax.random.uniform(kb, (fan_out, 1), jnp.float32, -bound, bound)
        params += [w, b]
    return tuple(params)


def reference_forward(x, params):
    """Pure-JAX mirror of the PyTorch forward (eval-mode dropout = identity)."""
    w0, b0, w1, b1, w2, b2, wo, bo = params
    mm = lambda a, b: jnp.dot(a, b, precision=lax.Precision.HIGHEST)
    h = _relu(mm(x, w0.T) + b0[:, 0])
    h = _relu(mm(h, w1.T) + b1[:, 0])
    h = _relu(h)                       # act(Dropout(h)) in eval mode
    h = _relu(mm(h, w2.T) + b2[:, 0])
    h = _relu(h)
    logits = mm(h, wo.T) + bo[:, 0]
    return jax.nn.log_softmax(logits, axis=1)


# ---------------------------------- main ----------------------------------- #
if __name__ == "__main__":
    # DNNModel(input_dim=32, layers=3, neurons_per_layer=[32,32,32],
    # dropout_rate=0.1, activation_fn=F.relu), eval mode.
    B, INPUT_DIM = 300, 32            # B not a tile multiple -> partial last block
    NEURONS = [32, 32, 32]

    key = jax.random.PRNGKey(0)
    kx, kp = jax.random.split(key)
    x = jax.random.normal(kx, (B, INPUT_DIM), jnp.float32)
    params = make_params(kp, INPUT_DIM, NEURONS)

    ref = reference_forward(x, params)

    # f32 path: forces a 3-step batch grid (TB=128, last block partial, 44 rows).
    out_f32 = jax.block_until_ready(
        dnn_forward(x, params, use_bf16=False, min_grid_steps=4))
    assert out_f32.shape == (B, 2)
    # log-softmax rows must normalize to 1 (tight check; catches the old
    # double-max bug independently of matmul-precision differences).
    assert jnp.allclose(jnp.sum(jnp.exp(out_f32), axis=1), 1.0, atol=1e-4)
    # Tolerance absorbs possible Mosaic-vs-XLA f32 matmul precision differences.
    assert jnp.max(jnp.abs(out_f32 - ref)) < 3e-2, "f32 kernel mismatch vs reference"

    # Default path: bf16 storage for x / weights, f32 accumulation, 2-step grid.
    out_bf16 = jax.block_until_ready(dnn_forward(x, params))
    assert out_bf16.shape == (B, 2)
    assert jnp.allclose(jnp.sum(jnp.exp(out_bf16), axis=1), 1.0, atol=1e-4)
    assert jnp.max(jnp.abs(out_bf16 - ref)) < 2e-1, "bf16 kernel mismatch vs reference"

    print("KERNEL_OK")
</pallas_src>

<mosaic_0001>
module attributes {stable_mosaic.version = 11 : i64} {
  func.func @_dnn_kernel(%arg0: i32, %arg1: memref<32x128xf32, #tpu.memory_space<vmem>>, %arg2: memref<32x32xf32, #tpu.memory_space<vmem>>, %arg3: memref<32x1xf32, #tpu.memory_space<vmem>>, %arg4: memref<32x32xf32, #tpu.memory_space<vmem>>, %arg5: memref<32x1xf32, #tpu.memory_space<vmem>>, %arg6: memref<32x32xf32, #tpu.memory_space<vmem>>, %arg7: memref<32x1xf32, #tpu.memory_space<vmem>>, %arg8: memref<2x32xf32, #tpu.memory_space<vmem>>, %arg9: memref<2x1xf32, #tpu.memory_space<vmem>>, %arg10: memref<2x128xf32, #tpu.memory_space<vmem>>) attributes {dimension_semantics = [#tpu.dimension_semantics<parallel>], iteration_bounds = array<i64: 3>, scalar_prefetch = 0 : i64, scratch_operands = 0 : i64, tpu.core_type = #tpu.core_type<tc>, window_params = [{transform_indices = @transform_0, window_bounds = array<i64: 32, 128>}, {pipeline_mode = #tpu.pipeline_mode<synchronous>, transform_indices = @transform_1, window_bounds = array<i64: 32, 32>}, {pipeline_mode = #tpu.pipeline_mode<synchronous>, transform_indices = @transform_2, window_bounds = array<i64: 32, 1>}, {pipeline_mode = #tpu.pipeline_mode<synchronous>, transform_indices = @transform_3, window_bounds = array<i64: 32, 32>}, {pipeline_mode = #tpu.pipeline_mode<synchronous>, transform_indices = @transform_4, window_bounds = array<i64: 32, 1>}, {pipeline_mode = #tpu.pipeline_mode<synchronous>, transform_indices = @transform_5, window_bounds = array<i64: 32, 32>}, {pipeline_mode = #tpu.pipeline_mode<synchronous>, transform_indices = @transform_6, window_bounds = array<i64: 32, 1>}, {pipeline_mode = #tpu.pipeline_mode<synchronous>, transform_indices = @transform_7, window_bounds = array<i64: 2, 32>}, {pipeline_mode = #tpu.pipeline_mode<synchronous>, transform_indices = @transform_8, window_bounds = array<i64: 2, 1>}, {transform_indices = @transform_9, window_bounds = array<i64: 2, 128>}]} {
    %c0 = arith.constant 0 : index
    %c0_0 = arith.constant 0 : index
    %0 = vector.load %arg1[%c0, %c0_0] : memref<32x128xf32, #tpu.memory_space<vmem>>, vector<32x128xf32>
    %c0_1 = arith.constant 0 : index
    %c0_2 = arith.constant 0 : index
    %1 = vector.load %arg2[%c0_1, %c0_2] : memref<32x32xf32, #tpu.memory_space<vmem>>, vector<32x32xf32>
    %cst = arith.constant dense<0.000000e+00> : vector<32x128xf32>
    %2 = tpu.matmul %1, %0, %cst {dimension_numbers = #tpu.dot_dimension_numbers<[1], [0], [0], [1], [0, 0, 1, 1], [], []>} : vector<32x32xf32>, vector<32x128xf32>, vector<32x128xf32> -> vector<32x128xf32>
    %c0_3 = arith.constant 0 : index
    %c0_4 = arith.constant 0 : index
    %3 = vector.load %arg3[%c0_3, %c0_4] : memref<32x1xf32, #tpu.memory_space<vmem>>, vector<32x1xf32>
    %4 = vector.broadcast %3 : vector<32x1xf32> to vector<32x128xf32>
    %5 = arith.addf %2, %4 : vector<32x128xf32>
    %cst_5 = arith.constant 0.000000e+00 : f32
    %6 = vector.broadcast %cst_5 : f32 to vector<32x128xf32>
    %7 = arith.maximumf %5, %6 : vector<32x128xf32>
    %c0_6 = arith.constant 0 : index
    %c0_7 = arith.constant 0 : index
    %8 = vector.load %arg4[%c0_6, %c0_7] : memref<32x32xf32, #tpu.memory_space<vmem>>, vector<32x32xf32>
    %cst_8 = arith.constant dense<0.000000e+00> : vector<32x128xf32>
    %9 = tpu.matmul %8, %7, %cst_8 {dimension_numbers = #tpu.dot_dimension_numbers<[1], [0], [0], [1], [0, 0, 1, 1], [], []>} : vector<32x32xf32>, vector<32x128xf32>, vector<32x128xf32> -> vector<32x128xf32>
    %c0_9 = arith.constant 0 : index
    %c0_10 = arith.constant 0 : index
    %10 = vector.load %arg5[%c0_9, %c0_10] : memref<32x1xf32, #tpu.memory_space<vmem>>, vector<32x1xf32>
    %11 = vector.broadcast %10 : vector<32x1xf32> to vector<32x128xf32>
    %12 = arith.addf %9, %11 : vector<32x128xf32>
    %cst_11 = arith.constant 0.000000e+00 : f32
    %13 = vector.broadcast %cst_11 : f32 to vector<32x128xf32>
    %14 = arith.maximumf %12, %13 : vector<32x128xf32>
    %c0_12 = arith.constant 0 : index
    %c0_13 = arith.constant 0 : index
    %15 = vector.load %arg6[%c0_12, %c0_13] : memref<32x32xf32, #tpu.memory_space<vmem>>, vector<32x32xf32>
    %cst_14 = arith.constant dense<0.000000e+00> : vector<32x128xf32>
    %16 = tpu.matmul %15, %14, %cst_14 {dimension_numbers = #tpu.dot_dimension_numbers<[1], [0], [0], [1], [0, 0, 1, 1], [], []>} : vector<32x32xf32>, vector<32x128xf32>, vector<32x128xf32> -> vector<32x128xf32>
    %c0_15 = arith.constant 0 : index
    %c0_16 = arith.constant 0 : index
    %17 = vector.load %arg7[%c0_15, %c0_16] : memref<32x1xf32, #tpu.memory_space<vmem>>, vector<32x1xf32>
    %18 = vector.broadcast %17 : vector<32x1xf32> to vector<32x128xf32>
    %19 = arith.addf %16, %18 : vector<32x128xf32>
    %cst_17 = arith.constant 0.000000e+00 : f32
    %20 = vector.broadcast %cst_17 : f32 to vector<32x128xf32>
    %21 = arith.maximumf %19, %20 : vector<32x128xf32>
    %c0_18 = arith.constant 0 : index
    %c0_19 = arith.constant 0 : index
    %22 = vector.load %arg8[%c0_18, %c0_19] : memref<2x32xf32, #tpu.memory_space<vmem>>, vector<2x32xf32>
    %cst_20 = arith.constant dense<0.000000e+00> : vector<2x128xf32>
    %23 = tpu.matmul %22, %21, %cst_20 {dimension_numbers = #tpu.dot_dimension_numbers<[1], [0], [0], [1], [0, 0, 1, 1], [], []>} : vector<2x32xf32>, vector<32x128xf32>, vector<2x128xf32> -> vector<2x128xf32>
    %c0_21 = arith.constant 0 : index
    %c0_22 = arith.constant 0 : index
    %24 = vector.load %arg9[%c0_21, %c0_22] : memref<2x1xf32, #tpu.memory_space<vmem>>, vector<2x1xf32>
    %25 = vector.broadcast %24 : vector<2x1xf32> to vector<2x128xf32>
    %26 = arith.addf %23, %25 : vector<2x128xf32>
    %27 = vector.extract_strided_slice %26 {offsets = [0, 0], sizes = [1, 128], strides = [1, 1]} : vector<2x128xf32> to vector<1x128xf32>
    %28 = vector.extract_strided_slice %26 {offsets = [1, 0], sizes = [1, 128], strides = [1, 1]} : vector<2x128xf32> to vector<1x128xf32>
    %29 = arith.maximumf %27, %28 : vector<1x128xf32>
    %30 = arith.subf %27, %29 : vector<1x128xf32>
    %31 = math.exp %30 : vector<1x128xf32>
    %32 = arith.subf %28, %29 : vector<1x128xf32>
    %33 = math.exp %32 : vector<1x128xf32>
    %34 = arith.addf %31, %33 : vector<1x128xf32>
    %35 = math.log %34 : vector<1x128xf32>
    %36 = arith.addf %29, %35 : vector<1x128xf32>
    %37 = vector.broadcast %36 : vector<1x128xf32> to vector<2x128xf32>
    %38 = arith.subf %26, %37 : vector<2x128xf32>
    %c0_23 = arith.constant 0 : index
    %c0_24 = arith.constant 0 : index
    %39 = vector.load %arg10[%c0_23, %c0_24] : memref<2x128xf32, #tpu.memory_space<vmem>>, vector<2x128xf32>
    tpu.vector_store %arg10[%c0_23, %c0_24], %38 {strides = array<i32>} : memref<2x128xf32, #tpu.memory_space<vmem>>, vector<2x128xf32>,
    return
  }
  func.func @transform_0(%arg0: i32) -> (i32, i32) {
    %c0_i32 = arith.constant 0 : i32
    %c0_i32_0 = arith.constant 0 : i32
    return %c0_i32, %arg0 : i32, i32
  }
  func.func @transform_1(%arg0: i32) -> (i32, i32) {
    %c0_i32 = arith.constant 0 : i32
    %c0_i32_0 = arith.constant 0 : i32
    %c0_i32_1 = arith.constant 0 : i32
    return %c0_i32, %c0_i32_0 : i32, i32
  }
  func.func @transform_2(%arg0: i32) -> (i32, i32) {
    %c0_i32 = arith.constant 0 : i32
    %c0_i32_0 = arith.constant 0 : i32
    %c0_i32_1 = arith.constant 0 : i32
    return %c0_i32, %c0_i32_0 : i32, i32
  }
  func.func @transform_3(%arg0: i32) -> (i32, i32) {
    %c0_i32 = arith.constant 0 : i32
    %c0_i32_0 = arith.constant 0 : i32
    %c0_i32_1 = arith.constant 0 : i32
    return %c0_i32, %c0_i32_0 : i32, i32
  }
  func.func @transform_4(%arg0: i32) -> (i32, i32) {
    %c0_i32 = arith.constant 0 : i32
    %c0_i32_0 = arith.constant 0 : i32
    %c0_i32_1 = arith.constant 0 : i32
    return %c0_i32, %c0_i32_0 : i32, i32
  }
  func.func @transform_5(%arg0: i32) -> (i32, i32) {
    %c0_i32 = arith.constant 0 : i32
    %c0_i32_0 = arith.constant 0 : i32
    %c0_i32_1 = arith.constant 0 : i32
    return %c0_i32, %c0_i32_0 : i32, i32
  }
  func.func @transform_6(%arg0: i32) -> (i32, i32) {
    %c0_i32 = arith.constant 0 : i32
    %c0_i32_0 = arith.constant 0 : i32
    %c0_i32_1 = arith.constant 0 : i32
    return %c0_i32, %c0_i32_0 : i32, i32
  }
  func.func @transform_7(%arg0: i32) -> (i32, i32) {
    %c0_i32 = arith.constant 0 : i32
    %c0_i32_0 = arith.constant 0 : i32
    %c0_i32_1 = arith.constant 0 : i32
    return %c0_i32, %c0_i32_0 : i32, i32
  }
  func.func @transform_8(%arg0: i32) -> (i32, i32) {
    %c0_i32 = arith.constant 0 : i32
    %c0_i32_0 = arith.constant 0 : i32
    %c0_i32_1 = arith.constant 0 : i32
    return %c0_i32, %c0_i32_0 : i32, i32
  }
  func.func @transform_9(%arg0: i32) -> (i32, i32) {
    %c0_i32 = arith.constant 0 : i32
    %c0_i32_0 = arith.constant 0 : i32
    return %c0_i32, %arg0 : i32, i32
  }
}

</mosaic_0001>

<bundles_post_ra>
// kernel: tpu_custom_call.1
= control target key start
LH: loop header
LB: loop body
LE: loop exit
PB: predicated region body
PF: predicated region fallthrough
CT: control target
= control target key end

     0   :  { %s1637_s0 = inlined_call_operand.vmem [shape: f32[32,300], index: 0, kind: input, shape index: {}]   ;;  %s1638_s1 = inlined_call_operand.hbm [shape: f32[32,32], index: 1, kind: input, shape index: {}]   ;;  %s1639_s2 = inlined_call_operand.vmem [shape: f32[32,1], index: 2, kind: input, shape index: {}]   ;;  %s1640_s3 = inlined_call_operand.hbm [shape: f32[32,32], index: 3, kind: input, shape index: {}]   ;;  %s1641_s4 = inlined_call_operand.vmem [shape: f32[32,1], index: 4, kind: input, shape index: {}]   ;;  %s1642_s5 = inlined_call_operand.hbm [shape: f32[32,32], index: 5, kind: input, shape index: {}]   ;;  %s1643_s6 = inlined_call_operand.vmem [shape: f32[32,1], index: 6, kind: input, shape index: {}]   ;;  %s1644_s7 = inlined_call_operand.vmem [shape: f32[2,32], index: 7, kind: input, shape index: {}]   ;;  %s1645_s8 = inlined_call_operand.vmem [shape: f32[2,1], index: 8, kind: input, shape index: {}]   ;;  %s1646_s9 = inlined_call_operand.hbm [shape: f32[2,300], index: 9, kind: output, shape index: {}]  }
   0x1   :  { %1650 = sst [smem:[#allocation14_spill]] %s1638_s1 }
   0x2   :  { %14 = vsyncpa [#allocation4], 0 }
   0x3   :  { %15 = vsyncpa [#allocation7], 0 }
   0x4   :  { %16 = vsyncpa [#allocation5], 0 }
   0x5   :  { %18 = vsyncpa [#allocation5 + $0x1], 0  ;;  %s1433_s30 = smov 0   ;;  %s1435_s10 = smov 0  }
   0x6   :  { %s1437_s11 = smov 0   ;;  %s1439_s12 = smov 0  }
   0x7 LB: > { %s1454_s13 = sadd.s32 4294967295, %s1372_s12   ;;  %s1030_s14 = sadd.s32 4294967294, %s1372_s12   ;;  %s1372_s12 = sphi %s1439_s12, %s1669_s12   ;;  %s1368_s11 = sphi %s1437_s11, %s1668_s11   ;;  %s1364_s10 = sphi %s1435_s10, %s1667_s10   ;;  %s1360_s30 = sphi %s1433_s30, %s1666_s30  }
   0x8   : > { %s1458_s15 = sadd.s32 1, %s1372_s12   ;;  %s31_s16 = sadd.s32 1, %s1368_s11 }
   0x9   : > { %s28_s17 = ssub.s32 %s1372_s12, %s1458_s15  ;;  %p38_p0 = scmp.ne.s32.totalorder %s1368_s11, %s1364_s10 }
   0xa   : > { %p29_p1 = scmp.eq.s32.totalorder %s28_s17, 0  ;;  %p39_p2 = scmp.eq.s32.totalorder %s1372_s12, 0 }
   0xb   : > { %p236_p3 = scmp.eq.s32.totalorder %s1454_s13, 2  ;;  %p241_p4 = scmp.ne.s32.totalorder %s1364_s10, %s1360_s30 }
   0xc   : > { %s1470_s18 = scalar_select %p29_p1, %s1368_s11, %s31_s16  }
   0xd   : > { %p1472_p5 = por %p39_p2, %p38_p0  ;;  %p1476_p6 = por %p236_p3, %p38_p0 }
   0xe   : > { %1651 = sst [smem:[#allocation13_spill]] %s1470_s18  ;;  %p242_p7 = scmp.eq.s32.totalorder %s1030_s14, 2 }
   0xf   : > { %s1653_s20 = scalar_select %p1476_p6, 1, 0 }
  0x10   : > { %p1031_p8 = scmp.ge.s32.totalorder %s1372_s12, 1  ;;  %p249_p9 = scmp.lt.s32.totalorder %s1372_s12, 4 }
  0x11   : > { %p1482_p10 = por %p242_p7, %p241_p4  ;;  %p1647_p11 = scmp.eq.s32.totalorder %s1454_s13, 0 }
  0x12   : > { %p1487_p12 = pnand %p1031_p8, %p249_p9  ;;  %s1374_s23 = smov [#allocation6]  }
  0x13   : > { %s1654_s21 = scalar_select %p1482_p10, 1, 0 }
  0x14   : > { %s1655_s22 = scalar_select %p1487_p12, 1, 0 }
  0x15   : > { %p1157_p13 = pneg %p1487_p12  ;;  %s277_s24 = sshll.u32 %s1374_s23, 4  ;;  %s278_s24 = int_to_ptr.vmem [resolvable:$true] %s277_s24 }
  0x16   : > { %s1375_s26 = smov [#allocation3]   ;;  %s1376_s28 = smov [#allocation8]  }
  0x17   : > { %p1495_p0 = pnand %p1647_p11, %p1157_p13  ;;  %s261_s27 = sshll.u32 %s1375_s26, 4  ;;  %s262_s27 = int_to_ptr.vmem [resolvable:$true] %s261_s27 }
  0x18   : > { %s293_s29 = sshll.u32 %s1376_s28, 4  ;;  %s1237_s14 = scalar_lea.vmem %s278_s24, 512  ;;  %s294_s29 = int_to_ptr.vmem [resolvable:$true] %s293_s29 }
  0x19   : > { %p1228_p1 = pneg %p1495_p0  ;;  %p1238_p2 = scmp.ne.s32.totalorder %s278_s24, %s1237_s14 }
  0x1a   : > { %p1245_p7 = scmp.lt.s32.totalorder %s278_s24, %s278_s24  ;;  %p1246_p8 = scmp.lt.s32.totalorder %s1237_s14, %s1237_s14 }
  0x1b   : > { %p1240_p3 = pnand %p1238_p2, %p1228_p1 }
  0x1c   : > { %p1247_p9 = por %p1246_p8, %p1245_p7 }
  0x1d   : > { %p1241_p4 = pneg %p1240_p3 }
  0x1f   : > { %p1248_p13 = pnand %p1247_p9, %p1241_p4 }
  0x21   : > { %1251 = shalt.err (!%p1248_p13)
}
  0x22   : > { %s1377_s16 = smov 128   ;;  %s1378_s17 = smov 8  }
  0x23   : > { %1163 = dma.hbm_to_vmem [thread:$0]  (!%p1495_p0), %s1640_s3, 512, %s278_s24, [#allocation7], %s1377_s16, %s1377_s16, %s1378_s17  }
  0x24   : > { %s1263_s28 = scalar_lea.vmem %s262_s27, 512  ;;  %p1271_p10 = scmp.lt.s32.totalorder %s262_s27, %s262_s27 }
  0x25   : > { %p1264_p11 = scmp.ne.s32.totalorder %s262_s27, %s1263_s28  ;;  %p1272_p6 = scmp.lt.s32.totalorder %s1263_s28, %s1263_s28 }
  0x27   : > { %p1266_p2 = pnand %p1264_p11, %p1228_p1  ;;  %p1273_p7 = por %p1272_p6, %p1271_p10 }
  0x29   : > { %p1267_p3 = pneg %p1266_p2 }
  0x2b   : > { %p1274_p4 = pnand %p1273_p7, %p1267_p3 }
  0x2d   : > { %1277 = shalt.err (!%p1274_p4)
}
  0x2e   : > { %s1657_s1 = sld [smem:[#allocation14_spill]]  ;;  %s1289_s24 = scalar_lea.vmem %s294_s29, 512 }
  0x2f   : > { %p1290_p8 = scmp.ne.s32.totalorder %s294_s29, %s1289_s24  ;;  %p1297_p13 = scmp.lt.s32.totalorder %s294_s29, %s294_s29 }
  0x30   : > { %p1298_p2 = scmp.lt.s32.totalorder %s1289_s24, %s1289_s24 }
  0x31   : > { %p1292_p9 = pnand %p1290_p8, %p1228_p1 }
  0x32   : > { %p1299_p12 = por %p1298_p2, %p1297_p13 }
  0x33   : > { %p1293_p11 = pneg %p1292_p9 }
  0x34   : > { %1160 = dma.hbm_to_vmem [thread:$0]  (!%p1495_p0), %s1657_s1, 512, %s262_s27, [#allocation4], %s1377_s16, %s1377_s16, %s1378_s17  }
  0x35   : > { %p1300_p6 = pnand %p1299_p12, %p1293_p11 }
  0x37   : > { %1303 = shalt.err (!%p1300_p6)
}
  0x38   : > { %1166 = dma.hbm_to_vmem [thread:$0]  (!%p1495_p0), %s1642_s5, 512, %s294_s29, [#allocation7], %s1377_s16, %s1377_s16, %s1378_s17  }
  0x39   : > { %p1035_p10 = scmp.ge.s32.totalorder %s1372_s12, 3 }
  0x3b   : > { %312 = sbr.rel (%p1035_p10) target bundleno = 70 (0x46), region = 48 }
  0x40   : > { %315 = sbr.rel (!%p1472_p5) target bundleno = 70 (0x46), region = 52  ;;  %s317_s18 = sand.u32 (%p1472_p5), 1, %s1368_s11  }
  0x41   : > { %s1037_s27 = sshll.u32 (%p1472_p5), %s1372_s12, 3  ;;  %s1036_s28 = sshll.u32 (%p1472_p5), %s317_s18, 5 }
  0x42   : > { %s321_s1 = scalar_lea.vmem (%p1472_p5), %s1637_s0, %s1037_s27  ;;  %s319_s25 = scalar_lea.vmem (%p1472_p5), [#allocation2], %s1036_s28 }
  0x43   : > { %v356_v0 = vld [vmem:[%s321_s1] sm:$0xff] (%p1472_p5)  ;;  %v358_v1 = vld [vmem:[%s321_s1 + $0x18] sm:$0xff] (%p1472_p5)  ;;  %v360_v2 = vld [vmem:[%s321_s1 + $0x30] sm:$0xff] (%p1472_p5) }
  0x44   : > { %357 = vst [vmem:[%s319_s25] sm:$0xff] (%p1472_p5), %v356_v0  ;;  %359 = vst [vmem:[%s319_s25 + $0x8] sm:$0xff] (%p1472_p5), %v358_v1  ;;  %v362_v3 = vld [vmem:[%s321_s1 + $0x48] sm:$0xff] (%p1472_p5) }
  0x45   : > { %361 = vst [vmem:[%s319_s25 + $0x10] sm:$0xff] %v360_v2  ;;  %363 = vst [vmem:[%s319_s25 + $0x18] sm:$0xff] %v362_v3 }
  0x46 PF: > { %p1658_p5 = scmp.ne.s32.totalorder %s1655_s22, 0 }
  0x47   : > { %s1536_s19 = sand.u32 (!%p1658_p5), 1, %s1364_s10   ;;  %p1659_p12 = scmp.eq.s32.totalorder (!%p1658_p5), %s1454_s13, 0 }
  0x48   : > { %372 = sbr.rel (%p1658_p5) target bundleno = 976 (0x3d0), region = 90  ;;  %s1039_s29 = sshll.u32 (!%p1658_p5), %s1536_s19, 5 }
  0x49   : > { %s377_s16 = scalar_lea.vmem (!%p1658_p5), [#allocation2], %s1039_s29 }
  0x4d   : > { %1347 = dma.done.wait (%p1659_p12), [#allocation4], 512   ;;  %p1660_p0 = pmov %p1659_p12 }
  0x4f   : > { %1349 = vsyncadd (%p1660_p0), [#allocation4], 4294966784  ;;  %p1661_p1 = pmov %p1660_p0 }
  0x50   : > { %p1662_p3 = pmov %p1660_p0 }
  0x51   : > { %1351 = dma.done.wait (%p1661_p1), [#allocation7], 1024  }
  0x52   : > { %1353 = vsyncadd (%p1662_p3), [#allocation7], 4294966272  ;;  %v1379_v4 = vmov 0   ;;  %vm454_vm0 = vcmask 261120   ;;  %v425_v5 = vld [vmem:[%s377_s16 + $0x18] sm:$0xff]  ;;  %v424_v6 = vld [vmem:[%s377_s16 + $0x10] sm:$0xff] }
  0x53   : > { %1218 = vset.pattern.permute.xlu0 %v1379_v4  ;;  %1219 = vset.pattern.permute.xlu1 %v1379_v4  ;;  %v426_v7 = vld [vmem:[#allocation3] sm:$0xff]  ;;  %v423_v8 = vld [vmem:[%s377_s16 + $0x8] sm:$0xff]  ;;  %v433_v9 = vld [vmem:[%s1639_s2 + $0x18] sm:$0xff]  ;;  %v1380_v2 = vmov 0.0   ;;  %vm1381_vm1 = vmmov 0   ;;  %s1043_s17 = sshll.u32 %s1536_s19, 1 }
  0x54   : > { %1090 = vmatprep.subr.mxu0 %v425_v5  ;;  %1098 = vmatprep.mubr.msk.f32.mxu0 %vm454_vm0, %v426_v7  ;;  %v431_v10 = vld [vmem:[%s1639_s2 + $0x8] sm:$0xff]  ;;  %v422_v11 = vld [vmem:[%s377_s16] sm:$0xff]  ;;  %v432_v12 = vld [vmem:[%s1639_s2 + $0x10] sm:$0xff]  ;;  %s1058_s23 = sshll.u32 %s1454_s13, 5  ;;  %s421_s26 = scalar_lea.vmem [#allocation9], %s1043_s17 }
  0x55   : > { %1091 = vmatpush3.msra.mxu0 %v425_v5  ;;  %451 = vperm.xlu0 %1218, %v433_v9   ;;  %v430_v13 = vld [vmem:[%s1639_s2] sm:$0xff]  ;;  %v427_v14 = vld [vmem:[#allocation3 + $0x8] sm:$0xff]  ;;  %v428_v15 = vld [vmem:[#allocation3 + $0x10] sm:$0xff]  ;;  %s934_s18 = sshll.u32 %s421_s26, 4  ;;  %s932_s14 = scalar_lea.hbm %s1646_s9, %s1058_s23  ;;  %s935_s18 = int_to_ptr.vmem [resolvable:$true] %s934_s18 }
  0x56   : > { %1092 = vmatprep.subr.mxu0 %v424_v6  ;;  %441 = vperm.xlu1 %1219, %v431_v10   ;;  %v563_v16 = vld [vmem:[%s1641_s4 + $0x18] sm:$0xff]  ;;  %v562_v17 = vld [vmem:[%s1641_s4 + $0x10] sm:$0xff]  ;;  %v561_v19 = vld [vmem:[%s1641_s4 + $0x8] sm:$0xff]  ;;  %s921_s24 = scalar_lea.sflag [#allocation5], %s1536_s19  ;;  %s1304_s25 = scalar_lea.vmem %s935_s18, 32 }
  0x57   : > { %1093 = vmatpush3.msra.mxu0 %v424_v6  ;;  %v429_v18 = vld [vmem:[#allocation3 + $0x18] sm:$0xff]  ;;  %v560_v20 = vld [vmem:[%s1641_s4] sm:$0xff]  ;;  %v691_v22 = vld [vmem:[%s1643_s6 + $0x10] sm:$0xff]  ;;  %p1305_p7 = scmp.ne.s32.totalorder %s935_s18, %s1304_s25  ;;  %p1663_p4 = scmp.ne.s32.totalorder %s1653_s20, 0 }
  0x58   : > { %1094 = vmatprep.subr.mxu0 %v423_v8  ;;  %v692_v21 = vld [vmem:[%s1643_s6 + $0x18] sm:$0xff]  ;;  %v690_v23 = vld [vmem:[%s1643_s6 + $0x8] sm:$0xff]  ;;  %v689_v24 = vld [vmem:[%s1643_s6] sm:$0xff]  ;;  %s1382_s29 = smov [#allocation9]  }
  0x59   : > { %1095 = vmatpush3.msra.mxu0 %v423_v8  ;;  %446 = vperm.xlu0 %1218, %v432_v12   ;;  %v815_v25 = vld [vmem:[%s1645_s8] sm:$0x3]  ;;  %v557_v43 = vld [vmem:[#allocation6 + $0x8] sm:$0xff]  ;;  %v558_v44 = vld [vmem:[#allocation6 + $0x10] sm:$0xff]  ;;  %p1306_p8 = pnand %p1305_p7, %p1663_p4  ;;  %s1308_s16 = sshll.u32 %s1382_s29, 4  ;;  %s1309_s16 = int_to_ptr.vmem [resolvable:$false] %s1308_s16 }
  0x5a   : > { %1096 = vmatprep.subr.mxu0 %v422_v11  ;;  %436 = vperm.xlu1 %1219, %v430_v13   ;;  %v556_v26 = vld [vmem:[#allocation6] sm:$0xff]  ;;  %v559_v45 = vld [vmem:[#allocation6 + $0x18] sm:$0xff]  ;;  %v686_v63 = vld [vmem:[#allocation8 + $0x8] sm:$0xff]  ;;  %s1310_s13 = scalar_lea.vmem %s1309_s16, 64  ;;  %p1311_p11 = scmp.lt.s32.totalorder %s935_s18, %s1309_s16 }
  0x5b   : > { %1097 = vmatpush3.msra.mxu0 %v422_v11  ;;  %1112 = vmatprep.mubr.msk.f32.mxu1 %vm454_vm0, %v556_v26  ;;  %v685_v46 = vld [vmem:[#allocation8] sm:$0xff]  ;;  %v687_v0 = vld [vmem:[#allocation8 + $0x10] sm:$0xff]  ;;  %v688_v1 = vld [vmem:[#allocation8 + $0x18] sm:$0xff]  ;;  %p1307_p9 = pneg %p1306_p8  ;;  %p1312_p13 = scmp.lt.s32.totalorder %s1310_s13, %s1304_s25 }
  0x5c   : > { %1099 = vmatmul.mubr.msk.f32.vlgmr.msra.gmra.mxu0 %vm454_vm0, %v427_v14 }
  0x5d   : > { %1101 = vmatprep.mubr.msk.f32.mxu0 %vm454_vm0, %v428_v15  ;;  %581 = vperm.xlu0 %1218, %v563_v16   ;;  %p1313_p2 = por %p1312_p13, %p1311_p11 }
  0x5e   : > { %576 = vperm.xlu1 %1219, %v562_v17  }
  0x5f   : > { %p1314_p6 = pnand %p1313_p2, %p1307_p9 }
  0x60   : > { %1102 = vmatmul.mubr.msk.f32.gmra.mxu0 %vm454_vm0, %v429_v18 }
  0x61   : > { %571 = vperm.xlu0 %1218, %v561_v19   ;;  %1126 = vmatprep.mubr.msk.f32.mxu0 %vm454_vm0, %v685_v46  ;;  %v814_v19 = vld [vmem:[%s1644_s7] sm:$0x3] }
  0x62   : > { %566 = vperm.xlu1 %1219, %v560_v20  }
  0x65   : > { %710 = vperm.xlu0 %1218, %v692_v21  }
  0x66   : > { %705 = vperm.xlu1 %1219, %v691_v22  }
  0x69   : > { %700 = vperm.xlu0 %1218, %v690_v23  }
  0x6a   : > { %695 = vperm.xlu1 %1219, %v689_v24  }
  0x6d   : > { %818 = vperm.xlu0 %1218, %v815_v25  }
  0xd0   : > { %v452_v27 = vpop.permute.xlu0 %451 }
  0xd1   : > { %v442_v29 = vpop.permute.xlu1 %441 }
  0xd4   : > { %v447_v33 = vpop.permute.xlu0 %446 }
  0xd5   : > { %v437_v38 = vpop.permute.xlu1 %436 }
  0xd8   : > { %v582_v47 = vpop.permute.xlu0 %581 }
  0xd9   : > { %v577_v49 = vpop.permute.xlu1 %576 }
  0xdc   : > { %v572_v53 = vpop.permute.xlu0 %571 }
  0xdd   : > { %v567_v58 = vpop.permute.xlu1 %566 }
  0xe0   : > { %v711_v3 = vpop.permute.xlu0 %710 }
  0xe1   : > { %v706_v5 = vpop.permute.xlu1 %705 }
  0xe4   : > { %v701_v9 = vpop.permute.xlu0 %700 }
  0xe5   : > { %v696_v14 = vpop.permute.xlu1 %695 }
  0xe8   : > { %v819_v20 = vpop.permute.xlu0 %818 }
 0x11c   : > { %v1100_v28 = vpop.f32.mrf.mxu0 }
 0x11d   : > { %v539_v35 = vadd.f32 %v1100_v28, %v442_v29 }
 0x11e   : > { %v533_v30 = vpop.f32.mrf.mxu0 }
 0x11f   : > { %v534_v39 = vadd.f32 %v533_v30, %v437_v38  ;;  %v553_v41 = vmax.f32 %v539_v35, 0.0  ;;  %v914_v35 = vlaneseq }
 0x120   : > { %v1103_v31 = vpop.f32.mrf.mxu0 }
 0x121   : > { %v549_v32 = vadd.f32 %v1103_v31, %v452_v27  ;;  %v552_v42 = vmax.f32 %v534_v39, 0.0 }
 0x122   : > { %v543_v34 = vpop.f32.mrf.mxu0 }
 0x123   : > { %v555_v36 = vmax.f32 %v549_v32, 0.0  ;;  %v544_v37 = vadd.f32 %v543_v34, %v447_v33 }
 0x125   : > { %v554_v40 = vmax.f32 %v544_v37, 0.0  ;;  %1104 = vmatprep.subr.mxu1 %v555_v36 }
 0x126   : > { %1105 = vmatpush3.msra.mxu1 %v555_v36  ;;  %v915_v36 = vshrl.u32 %v914_v35, 7 }
 0x127   : > { %1106 = vmatprep.subr.mxu1 %v554_v40 }
 0x128   : > { %1107 = vmatpush3.msra.mxu1 %v554_v40  ;;  %v916_v39 = vsub.s32 0, %v915_v36 }
 0x129   : > { %1108 = vmatprep.subr.mxu1 %v553_v41 }
 0x12a   : > { %1109 = vmatpush3.msra.mxu1 %v553_v41 }
 0x12b   : > { %1110 = vmatprep.subr.mxu1 %v552_v42 }
 0x12c   : > { %1111 = vmatpush3.msra.mxu1 %v552_v42 }
 0x12d   : > { %1113 = vmatmul.mubr.msk.f32.vlgmr.msra.gmra.mxu1 %vm454_vm0, %v557_v43  ;;  %1132 = vmatprep.subr.mxu1 %v1380_v2 }
 0x12e   : > { %1115 = vmatprep.mubr.msk.f32.mxu1 %vm454_vm0, %v558_v44 }
 0x131   : > { %1116 = vmatmul.mubr.msk.f32.gmra.mxu1 %vm454_vm0, %v559_v45 }
 0x132   : > { %1140 = vmatprep.mubr.msk.f32.mxu1 %vm1381_vm1, %v1380_v2 }
 0x1ed   : > { %v1114_v48 = vpop.f32.mrf.mxu1 }
 0x1ee   : > { %v668_v55 = vadd.f32 %v1114_v48, %v572_v53 }
 0x1ef   : > { %v662_v50 = vpop.f32.mrf.mxu1 }
 0x1f0   : > { %v663_v59 = vadd.f32 %v662_v50, %v567_v58  ;;  %v682_v61 = vmax.f32 %v668_v55, 0.0 }
 0x1f1   : > { %v1117_v51 = vpop.f32.mrf.mxu1 }
 0x1f2   : > { %v678_v52 = vadd.f32 %v1117_v51, %v582_v47  ;;  %v681_v62 = vmax.f32 %v663_v59, 0.0 }
 0x1f3   : > { %v672_v54 = vpop.f32.mrf.mxu1 }
 0x1f4   : > { %v684_v56 = vmax.f32 %v678_v52, 0.0  ;;  %v673_v57 = vadd.f32 %v672_v54, %v577_v49 }
 0x1f6   : > { %v683_v60 = vmax.f32 %v673_v57, 0.0  ;;  %1118 = vmatprep.subr.mxu0 %v684_v56 }
 0x1f7   : > { %1119 = vmatpush3.msra.mxu0 %v684_v56 }
 0x1f8   : > { %1120 = vmatprep.subr.mxu0 %v683_v60 }
 0x1f9   : > { %1121 = vmatpush3.msra.mxu0 %v683_v60 }
 0x1fa   : > { %1122 = vmatprep.subr.mxu0 %v682_v61 }
 0x1fb   : > { %1123 = vmatpush3.msra.mxu0 %v682_v61 }
 0x1fc   : > { %1124 = vmatprep.subr.mxu0 %v681_v62 }
 0x1fd   : > { %1125 = vmatpush3.msra.mxu0 %v681_v62 }
 0x1fe   : > { %1127 = vmatmul.mubr.msk.f32.vlgmr.msra.gmra.mxu0 %vm454_vm0, %v686_v63 }
 0x1ff   : > { %1129 = vmatprep.mubr.msk.f32.mxu0 %vm454_vm0, %v687_v0 }
 0x202   : > { %1130 = vmatmul.mubr.msk.f32.gmra.mxu0 %vm454_vm0, %v688_v1 }
 0x2be   : > { %v1128_v4 = vpop.f32.mrf.mxu0 }
 0x2bf   : > { %v797_v11 = vadd.f32 %v1128_v4, %v701_v9 }
 0x2c0   : > { %v791_v6 = vpop.f32.mrf.mxu0 }
 0x2c1   : > { %v792_v15 = vadd.f32 %v791_v6, %v696_v14  ;;  %v811_v17 = vmax.f32 %v797_v11, 0.0 }
 0x2c2   : > { %v1131_v7 = vpop.f32.mrf.mxu0 }
 0x2c3   : > { %v807_v8 = vadd.f32 %v1131_v7, %v711_v3  ;;  %v810_v18 = vmax.f32 %v792_v15, 0.0 }
 0x2c4   : > { %v801_v10 = vpop.f32.mrf.mxu0 }
 0x2c5   : > { %v813_v12 = vmax.f32 %v807_v8, 0.0  ;;  %v802_v13 = vadd.f32 %v801_v10, %v706_v5 }
 0x2c7   : > { %v812_v16 = vmax.f32 %v802_v13, 0.0  ;;  %1133 = vmatpush3.msra.mxu1 %v813_v12 }
 0x2c8   : > { %1134 = vmatprep.subr.mxu1 %v1380_v2 }
 0x2c9   : > { %1135 = vmatpush3.msra.mxu1 %v812_v16 }
 0x2ca   : > { %1136 = vmatprep.subr.mxu1 %v1380_v2 }
 0x2cb   : > { %1137 = vmatpush3.msra.mxu1 %v811_v17 }
 0x2cc   : > { %1138 = vmatprep.subr.mxu1 %v1380_v2 }
 0x2cd   : > { %1139 = vmatpush3.msra.mxu1 %v810_v18 }
 0x2ce   : > { %1141 = vmatmul.mubr.msk.f32.vlgmr.msra.gmra.mxu1 %vm454_vm0, %v814_v19 }
 0x38e   : > { %v890_v21 = vpop.f32.mrf.mxu1 }
 0x38f   : > { %v891_v22 = vadd.f32 %v890_v21, %v819_v20 }
 0x390   : > { %v1142_v23 = vpop.f32.mrf.mxu1 }
 0x391   : > { %v895_v24 = vrot.slane %v891_v22, 1 }
 0x393   : > { %v897_v25 = vmax.f32 %v891_v22, %v895_v24 }
 0x395   : > { %v898_v26 = vsub.f32 %v891_v22, %v897_v25  ;;  %v902_v27 = vrot.slane %v897_v25, 7 }
 0x397   : > { %v904_v28 = vsub.f32 %v891_v22, %v902_v27  ;;  %v899_v29 = vmul.f32 1.442695, %v898_v26 }
 0x399   : > { %v905_v30 = vmul.f32 1.442695, %v904_v28 }
 0x39b   : > { %1220 = vpow2.f32 %v905_v30 }
 0x39c   : > { %1222 = vpow2.f32 %v899_v29 }
 0x3a8   : > { %v1221_v31 = vpop.eup %1220 }
 0x3a9   : > { %v908_v32 = vrot.slane %v1221_v31, 1  ;;  %v1223_v33 = vpop.eup %1222 }
 0x3ab   : > { %v910_v34 = vadd.f32 %v1223_v33, %v908_v32 }
 0x3ad   : > { %1224 = vlog2.f32 %v910_v34 }
 0x3ba   : > { %v1225_v37 = vpop.eup %1224 }
 0x3bb   : > { %v912_v38 = vmul.f32 0.6931472, %v1225_v37 }
 0x3bd   : > { %v913_v40 = vadd.f32 %v912_v38, %v897_v25 }
 0x3bf   : > { %v917_v41 = vrot.slane %v913_v40, %v916_v39 }
 0x3c1   : > { %v918_v42 = vsub.f32 %v891_v22, %v917_v41 }
 0x3c3   : > { %919 = vst [vmem:[%s421_s26] sm:$0x3] %v918_v42 }
 0x3c4   : > { %1317 = shalt.err (!%p1314_p6)
}
 0x3c5   : > { %s1318_s1 = scalar_lea.hbm %s932_s14, 32  ;;  %s1322_s17 = scalar_lea.hbm %s1646_s9, 96 }
 0x3c6   : > { %p1319_p10 = scmp.ne.s32.totalorder %s932_s14, %s1318_s1  ;;  %p1323_p0 = scmp.lt.s32.totalorder %s932_s14, %s1646_s9 }
 0x3c7   : > { %p1324_p1 = scmp.lt.s32.totalorder %s1322_s17, %s1318_s1 }
 0x3c8   : > { %p1320_p5 = pnand %p1319_p10, %p1663_p4 }
 0x3c9   : > { %p1325_p3 = por %p1324_p1, %p1323_p0 }
 0x3ca   : > { %p1321_p12 = pneg %p1320_p5 }
 0x3cc   : > { %p1326_p7 = pnand %p1325_p3, %p1321_p12 }
 0x3ce   : > { %1329 = shalt.err (!%p1326_p7)
}
 0x3cf   : > { %1155 = dma.vmem_to_hbm [thread:$0]  (%p1663_p4), %s935_s18, 32, %s932_s14, %s921_s24  }
 0x3d0 PF: > { %p1177_p8 = scmp.ge.s32.totalorder %s1372_s12, 2  ;;  %s946_s27 = sand.u32 1, %s1360_s30  }
 0x3d1   : > { %p1664_p9 = scmp.ne.s32.totalorder %s1654_s21, 0  ;;  %s947_s28 = scalar_lea.sflag [#allocation5], %s946_s27 }
 0x3d3   : > { %p1168_p11 = pnand %p1177_p8, %p1664_p9 }
 0x3d5   : > { %p1169_p13 = pneg %p1168_p11 }
 0x3d7   : > { %1355 = dma.done.wait (%p1169_p13), %s947_s28, 32  }
 0x3d8   : > { %1357 = vsyncadd (%p1169_p13), %s947_s28, 4294967264  ;;  %s1665_s25 = sld [smem:[#allocation13_spill]]  ;;  %p21_p2 = scmp.ge.s32.totalorder %s1458_s15, 5  }
 0x3d9   : > { %s1666_s30 = smov %s1364_s10  ;;  %s1667_s10 = smov %s1368_s11 }
 0x3da   : > { %s1669_s12 = smov %s1458_s15  ;;  %23 = sbr.rel (!%p21_p2) target bundleno = 7 (0x7), region = 147 }
 0x3de   : > { %s1668_s11 = smov %s1665_s25 }
 0x3df   :  { %952 = vsyncpa [#allocation4], 1 }
 0x3e0   :  { %954 = vsyncpa [#allocation4 + $0x1], 1 }
 0x3e1   :  { %955 = vsyncpa [#allocation7], 1 }
 0x3e2   :  { %956 = vsyncpa [#allocation5], 1 }
 0x3e3   :  { %958 = vsyncpa [#allocation5 + $0x1], 1 }

</bundles_post_ra>
